<compile_context>
chip_gen: v7x
topology: tpu7x:2x2x1
jax: 0.10.0
libtpu: 0.0.40
codegen_flags: <defaults>
</compile_context>

<pallas_src>
import math

import jax
import jax.numpy as jnp
from jax.experimental import pallas as pl
from jax.experimental.pallas import tpu as pltpu


_H1 = 256          # hidden1 width
_H2 = 64           # hidden2 width (logical)
_H2_PAD = 128      # hidden2 width padded to a full 128-lane register
_NC_PAD = 128      # class logits padded to a full 128-lane register
_NEG_INF = -1e30   # bias on padded class columns -> exp() underflows to 0


def _mer_kernel(x_ref, w1_ref, b1_ref, w2_ref, b2_ref, w3_ref, b3_ref, o_ref):
    # x arrives in its storage dtype (f32); cast to the weight dtype on the VPU
    # right before the MXU matmul so the wrapper never materializes a bf16
    # copy of x in HBM. All accumulation / bias / ReLU / softmax stay f32.
    x = x_ref[...].astype(w1_ref.dtype)

    h1 = jnp.dot(x, w1_ref[...], preferred_element_type=jnp.float32) + b1_ref[...]
    h1 = jnp.maximum(h1, 0.0)

    h2 = jnp.dot(h1.astype(w2_ref.dtype), w2_ref[...],
                 preferred_element_type=jnp.float32) + b2_ref[...]
    h2 = jnp.maximum(h2, 0.0)

    logits = jnp.dot(h2.astype(w3_ref.dtype), w3_ref[...],
                     preferred_element_type=jnp.float32) + b3_ref[...]

    # Softmax over the (padded) class axis. Padded columns have bias -1e30 so
    # exp() underflows to exactly 0 and they do not perturb the row sum.
    m = jnp.max(logits, axis=-1, keepdims=True)
    e = jnp.exp(logits - m)
    denom = jnp.sum(e, axis=-1, keepdims=True)
    o_ref[...] = (e * pl.reciprocal(denom, approx=True)).astype(o_ref.dtype)


def _round_up(n, m):
    return ((n + m - 1) // m) * m


def mer_classifier_forward(x, params, *, block_b=2048,
                           compute_dtype=jnp.bfloat16,
                           out_dtype=jnp.bfloat16):
    """Forward pass of MERClassifer.

    x: (B, ...) — flattened to (B, input_size) like torch's flatten(start_dim=1).
    params: (w1, b1, w2, b2, w3, b3); weights already stored as (in, out).
    Note: default bf16 matmul inputs / bf16 output lose ~3 significant digits;
    fine for classification, use compute_dtype=out_dtype=float32 for f32 parity.
    """
    w1, b1, w2, b2, w3, b3 = params
    input_size = w1.shape[0]
    n_class = w3.shape[1]
    assert n_class <= _NC_PAD, f"n_class={n_class} must be <= {_NC_PAD}"
    assert w1.shape[1] == _H1 and w2.shape == (_H1, _H2) and w3.shape[0] == _H2

    B = x.shape[0]
    x2d = x.reshape(B, -1)                       # flatten only; keep storage dtype
    assert x2d.shape[1] == input_size
    x_itemsize = jnp.dtype(x2d.dtype).itemsize
    out_itemsize = jnp.dtype(out_dtype).itemsize

    # --- lane-dense weight / bias padding (tiny, one-time) -------------------
    w1c = w1.astype(compute_dtype)                                   # (in, 256)
    b1c = b1.reshape(1, -1).astype(jnp.float32)                      # (1, 256)

    w2p = jnp.zeros((_H1, _H2_PAD), compute_dtype).at[:, :_H2].set(
        w2.astype(compute_dtype))
    b2p = jnp.zeros((1, _H2_PAD), jnp.float32).at[:, :_H2].set(
        b2.reshape(1, -1).astype(jnp.float32))

    w3p = jnp.zeros((_H2_PAD, _NC_PAD), compute_dtype).at[:_H2, :n_class].set(
        w3.astype(compute_dtype))
    b3p = jnp.full((1, _NC_PAD), _NEG_INF, jnp.float32).at[:, :n_class].set(
        b3.reshape(1, -1).astype(jnp.float32))

    weight_bytes = sum(int(a.size) * a.dtype.itemsize
                       for a in (w1c, b1c, w2p, b2p, w3p, b3p))

    # --- batch tile selection -------------------------------------------------
    # Multiple of 8 (sublane rule), capped so the grid has >= 2 steps when the
    # batch allows it (v7x megacore), and capped by a per-step VMEM budget.
    tb = max(8, _round_up(min(block_b, _round_up(B, 8)), 8))
    half = max(8, _round_up(-(-B // 2), 8))      # ceil(B/2) rounded to 8
    tb = min(tb, half)

    def step_vmem(t):
        return (2 * t * input_size * x_itemsize            # x tile, double-buffered
                + 2 * t * _NC_PAD * out_itemsize           # out tile, double-buffered
                + 2 * weight_bytes                         # resident weights/biases
                + t * (_H1 + _H2_PAD + 2 * _NC_PAD) * 4)   # f32 h1/h2/logits/e temps

    while tb > 8 and step_vmem(tb) > (24 << 20):           # stay inside v7x VMEM
        tb = max(8, _round_up(tb // 2, 8))

    bp = _round_up(B, tb)                       # padded batch
    if bp != B:
        x2d = jnp.pad(x2d, ((0, bp - B), (0, 0)))
    grid = (bp // tb,)

    vmem_limit = int(min(max(step_vmem(tb) * 3 // 2, 32 << 20), 64 << 20))

    resident = lambda i: (0, 0)                 # weights/biases: same block each step
    tiled = lambda i: (i, 0)                    # x / output: walk the batch

    flops = 2 * bp * (input_size * _H1 + _H1 * _H2_PAD + _H2_PAD * _NC_PAD)
    bytes_accessed = (int(x2d.size) * x_itemsize
                      + weight_bytes
                      + bp * _NC_PAD * out_itemsize)

    out = pl.pallas_call(
        _mer_kernel,
        out_shape=jax.ShapeDtypeStruct((bp, _NC_PAD), out_dtype),
        grid=grid,
        in_specs=[
            pl.BlockSpec((tb, input_size), tiled),
            pl.BlockSpec((input_size, _H1), resident),
            pl.BlockSpec((1, _H1), resident),
            pl.BlockSpec((_H1, _H2_PAD), resident),
            pl.BlockSpec((1, _H2_PAD), resident),
            pl.BlockSpec((_H2_PAD, _NC_PAD), resident),
            pl.BlockSpec((1, _NC_PAD), resident),
        ],
        out_specs=pl.BlockSpec((tb, _NC_PAD), tiled),
        compiler_params=pltpu.CompilerParams(
            dimension_semantics=("parallel",),
            vmem_limit_bytes=vmem_limit),
        cost_estimate=pl.CostEstimate(
            flops=flops,
            transcendentals=bp * _NC_PAD,
            bytes_accessed=bytes_accessed),
    )(x2d, w1c, b1c, w2p, b2p, w3p, b3p)

    return out[:B, :n_class]


def init_params(key, input_size=160, n_class=7):
    """Deterministic init mirroring the PyTorch module's __init__.

    Weights are stored pre-transposed to (in, out). kaiming_uniform_ (relu):
    bound = sqrt(6/fan_in). xavier_uniform_: bound = sqrt(6/(fan_in+fan_out)).
    Biases use PyTorch Linear default: uniform(+-1/sqrt(fan_in)).
    """
    ks = jax.random.split(key, 6)

    def uniform(k, shape, bound):
        return jax.random.uniform(k, shape, jnp.float32, -bound, bound)

    w1 = uniform(ks[0], (input_size, 256), math.sqrt(6.0 / input_size))
    b1 = uniform(ks[1], (1, 256), 1.0 / math.sqrt(input_size))
    w2 = uniform(ks[2], (256, 64), math.sqrt(6.0 / 256))
    b2 = uniform(ks[3], (1, 64), 1.0 / math.sqrt(256))
    w3 = uniform(ks[4], (64, n_class), math.sqrt(6.0 / (64 + n_class)))
    b3 = uniform(ks[5], (1, n_class), 1.0 / math.sqrt(64))
    return (w1, b1, w2, b2, w3, b3)


def reference_forward(x, params):
    """Pure-JAX (f32) reference of the PyTorch forward for validation."""
    w1, b1, w2, b2, w3, b3 = params
    h = x.reshape(x.shape[0], -1)
    h = jnp.maximum(h @ w1 + b1, 0.0)
    h = jnp.maximum(h @ w2 + b2, 0.0)
    logits = h @ w3 + b3
    return jax.nn.softmax(logits, axis=1)


if __name__ == "__main__":
    key = jax.random.PRNGKey(0)
    k_x, k_p = jax.random.split(key)

    B, input_size, n_class = 8, 160, 7
    # Multi-dim input to exercise flatten(start_dim=1): (8, 4, 40) -> (8, 160)
    x = jax.random.normal(k_x, (B, 4, 40), dtype=jnp.float32)
    params = init_params(k_p, input_size=input_size, n_class=n_class)
    ref = reference_forward(x, params)

    # f32 compute/output path: near-exact vs f32 reference (approx reciprocal
    # contributes ~2e-4 relative error).
    out_f32 = jax.block_until_ready(
        mer_classifier_forward(x, params, compute_dtype=jnp.float32,
                               out_dtype=jnp.float32))
    assert out_f32.shape == (B, n_class)
    assert jnp.allclose(out_f32, ref, atol=2e-3, rtol=2e-3)

    # Default bf16 MXU inputs + bf16 output: looser tolerance.
    out = jax.block_until_ready(mer_classifier_forward(x, params))
    assert out.shape == (B, n_class)
    assert jnp.allclose(out.astype(jnp.float32), ref, atol=3e-2, rtol=3e-2)
    assert jnp.allclose(jnp.sum(out.astype(jnp.float32), axis=1),
                        jnp.ones((B,)), atol=2e-2)

    # Exercise a multi-step grid with a ragged batch (200 rows, 64-row tiles).
    x_big = jax.random.normal(k_x, (200, input_size), dtype=jnp.float32)
    out_big = jax.block_until_ready(
        mer_classifier_forward(x_big, params, block_b=64))
    assert out_big.shape == (200, n_class)
    assert jnp.allclose(out_big.astype(jnp.float32),
                        reference_forward(x_big, params),
                        atol=3e-2, rtol=3e-2)

    print("KERNEL_OK")
</pallas_src>

<mosaic_0001>
module attributes {stable_mosaic.version = 11 : i64} {
  func.func @_mer_kernel(%arg0: i32, %arg1: memref<8x160xf32, #tpu.memory_space<vmem>>, %arg2: memref<160x256xf32, #tpu.memory_space<vmem>>, %arg3: memref<1x256xf32, #tpu.memory_space<vmem>>, %arg4: memref<256x128xf32, #tpu.memory_space<vmem>>, %arg5: memref<1x128xf32, #tpu.memory_space<vmem>>, %arg6: memref<128x128xf32, #tpu.memory_space<vmem>>, %arg7: memref<1x128xf32, #tpu.memory_space<vmem>>, %arg8: memref<8x128xf32, #tpu.memory_space<vmem>>) attributes {dimension_semantics = [#tpu.dimension_semantics<parallel>], iteration_bounds = array<i64: 1>, scalar_prefetch = 0 : i64, scratch_operands = 0 : i64, tpu.core_type = #tpu.core_type<tc>, window_params = [{transform_indices = @transform_0, window_bounds = array<i64: 8, 160>}, {pipeline_mode = #tpu.pipeline_mode<synchronous>, transform_indices = @transform_1, window_bounds = array<i64: 160, 256>}, {pipeline_mode = #tpu.pipeline_mode<synchronous>, transform_indices = @transform_2, window_bounds = array<i64: 1, 256>}, {pipeline_mode = #tpu.pipeline_mode<synchronous>, transform_indices = @transform_3, window_bounds = array<i64: 256, 128>}, {pipeline_mode = #tpu.pipeline_mode<synchronous>, transform_indices = @transform_4, window_bounds = array<i64: 1, 128>}, {pipeline_mode = #tpu.pipeline_mode<synchronous>, transform_indices = @transform_5, window_bounds = array<i64: 128, 128>}, {pipeline_mode = #tpu.pipeline_mode<synchronous>, transform_indices = @transform_6, window_bounds = array<i64: 1, 128>}, {transform_indices = @transform_7, window_bounds = array<i64: 8, 128>}]} {
    %c0 = arith.constant 0 : index
    %c0_0 = arith.constant 0 : index
    %0 = vector.load %arg1[%c0, %c0_0] : memref<8x160xf32, #tpu.memory_space<vmem>>, vector<8x160xf32>
    %c0_1 = arith.constant 0 : index
    %c0_2 = arith.constant 0 : index
    %1 = vector.load %arg2[%c0_1, %c0_2] : memref<160x256xf32, #tpu.memory_space<vmem>>, vector<160x256xf32>
    %cst = arith.constant dense<0.000000e+00> : vector<8x256xf32>
    %2 = tpu.matmul %0, %1, %cst {dimension_numbers = #tpu.dot_dimension_numbers<[1], [0], [0], [1], [0, 0, 1, 1], [], []>} : vector<8x160xf32>, vector<160x256xf32>, vector<8x256xf32> -> vector<8x256xf32>
    %c0_3 = arith.constant 0 : index
    %c0_4 = arith.constant 0 : index
    %3 = vector.load %arg3[%c0_3, %c0_4] : memref<1x256xf32, #tpu.memory_space<vmem>>, vector<1x256xf32>
    %4 = vector.broadcast %3 : vector<1x256xf32> to vector<8x256xf32>
    %5 = arith.addf %2, %4 : vector<8x256xf32>
    %cst_5 = arith.constant 0.000000e+00 : f32
    %6 = vector.broadcast %cst_5 : f32 to vector<8x256xf32>
    %7 = arith.maximumf %5, %6 : vector<8x256xf32>
    %c0_6 = arith.constant 0 : index
    %c0_7 = arith.constant 0 : index
    %8 = vector.load %arg4[%c0_6, %c0_7] : memref<256x128xf32, #tpu.memory_space<vmem>>, vector<256x128xf32>
    %cst_8 = arith.constant dense<0.000000e+00> : vector<8x128xf32>
    %9 = tpu.matmul %7, %8, %cst_8 {dimension_numbers = #tpu.dot_dimension_numbers<[1], [0], [0], [1], [0, 0, 1, 1], [], []>} : vector<8x256xf32>, vector<256x128xf32>, vector<8x128xf32> -> vector<8x128xf32>
    %c0_9 = arith.constant 0 : index
    %c0_10 = arith.constant 0 : index
    %10 = vector.load %arg5[%c0_9, %c0_10] : memref<1x128xf32, #tpu.memory_space<vmem>>, vector<1x128xf32>
    %11 = vector.broadcast %10 : vector<1x128xf32> to vector<8x128xf32>
    %12 = arith.addf %9, %11 : vector<8x128xf32>
    %cst_11 = arith.constant 0.000000e+00 : f32
    %13 = vector.broadcast %cst_11 : f32 to vector<8x128xf32>
    %14 = arith.maximumf %12, %13 : vector<8x128xf32>
    %c0_12 = arith.constant 0 : index
    %c0_13 = arith.constant 0 : index
    %15 = vector.load %arg6[%c0_12, %c0_13] : memref<128x128xf32, #tpu.memory_space<vmem>>, vector<128x128xf32>
    %cst_14 = arith.constant dense<0.000000e+00> : vector<8x128xf32>
    %16 = tpu.matmul %14, %15, %cst_14 {dimension_numbers = #tpu.dot_dimension_numbers<[1], [0], [0], [1], [0, 0, 1, 1], [], []>} : vector<8x128xf32>, vector<128x128xf32>, vector<8x128xf32> -> vector<8x128xf32>
    %c0_15 = arith.constant 0 : index
    %c0_16 = arith.constant 0 : index
    %17 = vector.load %arg7[%c0_15, %c0_16] : memref<1x128xf32, #tpu.memory_space<vmem>>, vector<1x128xf32>
    %18 = vector.broadcast %17 : vector<1x128xf32> to vector<8x128xf32>
    %19 = arith.addf %16, %18 : vector<8x128xf32>
    %cst_17 = arith.constant dense<0xFF800000> : vector<8xf32>
    %20 = vector.multi_reduction <maximumf>, %19, %cst_17 [1] : vector<8x128xf32> to vector<8xf32>
    %21 = vector.shape_cast %20 : vector<8xf32> to vector<8x1xf32>
    %22 = vector.broadcast %21 : vector<8x1xf32> to vector<8x128xf32>
    %23 = arith.subf %19, %22 : vector<8x128xf32>
    %24 = math.exp %23 : vector<8x128xf32>
    %cst_18 = arith.constant dense<0.000000e+00> : vector<8xf32>
    %25 = vector.multi_reduction <add>, %24, %cst_18 [1] : vector<8x128xf32> to vector<8xf32>
    %26 = vector.shape_cast %25 : vector<8xf32> to vector<8x1xf32>
    %27 = tpu.reciprocal %26 {approx = true} : vector<8x1xf32> -> vector<8x1xf32>
    %28 = vector.broadcast %27 : vector<8x1xf32> to vector<8x128xf32>
    %29 = arith.mulf %24, %28 : vector<8x128xf32>
    %c0_19 = arith.constant 0 : index
    %c0_20 = arith.constant 0 : index
    %30 = vector.load %arg8[%c0_19, %c0_20] : memref<8x128xf32, #tpu.memory_space<vmem>>, vector<8x128xf32>
    tpu.vector_store %arg8[%c0_19, %c0_20], %29 {strides = array<i32>} : memref<8x128xf32, #tpu.memory_space<vmem>>, vector<8x128xf32>,
    return
  }
  func.func @transform_0(%arg0: i32) -> (i32, i32) {
    %c0_i32 = arith.constant 0 : i32
    %c0_i32_0 = arith.constant 0 : i32
    return %arg0, %c0_i32 : i32, i32
  }
  func.func @transform_1(%arg0: i32) -> (i32, i32) {
    %c0_i32 = arith.constant 0 : i32
    %c0_i32_0 = arith.constant 0 : i32
    %c0_i32_1 = arith.constant 0 : i32
    return %c0_i32, %c0_i32_0 : i32, i32
  }
  func.func @transform_2(%arg0: i32) -> (i32, i32) {
    %c0_i32 = arith.constant 0 : i32
    %c0_i32_0 = arith.constant 0 : i32
    %c0_i32_1 = arith.constant 0 : i32
    return %c0_i32, %c0_i32_0 : i32, i32
  }
  func.func @transform_3(%arg0: i32) -> (i32, i32) {
    %c0_i32 = arith.constant 0 : i32
    %c0_i32_0 = arith.constant 0 : i32
    %c0_i32_1 = arith.constant 0 : i32
    return %c0_i32, %c0_i32_0 : i32, i32
  }
  func.func @transform_4(%arg0: i32) -> (i32, i32) {
    %c0_i32 = arith.constant 0 : i32
    %c0_i32_0 = arith.constant 0 : i32
    %c0_i32_1 = arith.constant 0 : i32
    return %c0_i32, %c0_i32_0 : i32, i32
  }
  func.func @transform_5(%arg0: i32) -> (i32, i32) {
    %c0_i32 = arith.constant 0 : i32
    %c0_i32_0 = arith.constant 0 : i32
    %c0_i32_1 = arith.constant 0 : i32
    return %c0_i32, %c0_i32_0 : i32, i32
  }
  func.func @transform_6(%arg0: i32) -> (i32, i32) {
    %c0_i32 = arith.constant 0 : i32
    %c0_i32_0 = arith.constant 0 : i32
    %c0_i32_1 = arith.constant 0 : i32
    return %c0_i32, %c0_i32_0 : i32, i32
  }
  func.func @transform_7(%arg0: i32) -> (i32, i32) {
    %c0_i32 = arith.constant 0 : i32
    %c0_i32_0 = arith.constant 0 : i32
    return %arg0, %c0_i32 : i32, i32
  }
}

</mosaic_0001>

<bundles_post_ra>
// kernel: tpu_custom_call.1
= control target key start
LH: loop header
LB: loop body
LE: loop exit
PB: predicated region body
PF: predicated region fallthrough
CT: control target
= control target key end

     0   :  { %12 = vsyncpa [#allocation3], 0  ;;  %s882_s0 = inlined_call_operand.hbm [shape: f32[8,160], index: 0, kind: input, shape index: {}]   ;;  %s883_s1 = inlined_call_operand.hbm [shape: f32[160,256], index: 1, kind: input, shape index: {}]   ;;  %s884_s2 = inlined_call_operand.vmem [shape: f32[1,256], index: 2, kind: input, shape index: {}]   ;;  %s885_s3 = inlined_call_operand.hbm [shape: f32[256,128], index: 3, kind: input, shape index: {}]   ;;  %s886_s4 = inlined_call_operand.vmem [shape: f32[1,128], index: 4, kind: input, shape index: {}]   ;;  %s887_s5 = inlined_call_operand.hbm [shape: f32[128,128], index: 5, kind: input, shape index: {}]   ;;  %s888_s6 = inlined_call_operand.vmem [shape: f32[1,128], index: 6, kind: input, shape index: {}]   ;;  %s889_s7 = inlined_call_operand.hbm [shape: f32[8,128], index: 7, kind: output, shape index: {}]  }
   0x1   :  { %13 = vsyncpa [#allocation6], 0 }
   0x2   :  { %14 = vsyncpa [#allocation9], 0 }
   0x3   :  { %15 = vsyncpa [#allocation4], 0  ;;  %s761_s24 = smov [#allocation5]   ;;  %s643_s28 = scalar_lea.hbm %s883_s1, 5120 }
   0x4   :  { %s31_s25 = sshll.u32 %s761_s24, 4  ;;  %p644_p0 = scmp.ne.s32.totalorder %s883_s1, %s643_s28  ;;  %s32_s25 = int_to_ptr.vmem [resolvable:$true] %s31_s25 }
   0x5   :  { %p647_p1 = scmp.lt.u32.totalorder %s643_s28, %s883_s1 }
   0x7   :  { %p649_p2 = pnand %p647_p1, %p644_p0 }
   0x9   :  { %652 = shalt.err (!%p649_p2)
}
   0xa   :  { %s653_s10 = scalar_lea.vmem %s32_s25, 5120  ;;  %p658_p4 = scmp.lt.s32.totalorder %s32_s25, %s32_s25 }
   0xb   :  { %p654_p3 = scmp.ne.s32.totalorder %s32_s25, %s653_s10  ;;  %p659_p5 = scmp.lt.s32.totalorder %s653_s10, %s653_s10 }
   0xd   :  { %p660_p6 = por %p659_p5, %p658_p4 }
   0xf   :  { %p661_p7 = pnand %p660_p6, %p654_p3 }
  0x11   :  { %664 = shalt.err (!%p661_p7)
}
  0x12   :  { %s762_s11 = smov 256   ;;  %s763_s12 = smov 16  }
  0x13   :  { %37 = dma.hbm_to_vmem [thread:$0]  %s883_s1, 5120, %s32_s25, [#allocation6], %s762_s11, %s762_s11, %s763_s12  }
  0x14   :  { %s764_s15 = smov [#allocation2]   ;;  %s765_s17 = smov [#allocation7]  }
  0x15   :  { %s22_s16 = sshll.u32 %s764_s15, 4  ;;  %s45_s18 = sshll.u32 %s765_s17, 4  ;;  %s23_s16 = int_to_ptr.vmem [resolvable:$true] %s22_s16  ;;  %s46_s18 = int_to_ptr.vmem [resolvable:$true] %s45_s18 }
  0x16   :  { %s665_s21 = scalar_lea.hbm %s882_s0, 256 }
  0x17   :  { %p666_p8 = scmp.ne.s32.totalorder %s882_s0, %s665_s21  ;;  %p669_p9 = scmp.lt.u32.totalorder %s665_s21, %s882_s0 }
  0x19   :  { %p671_p10 = pnand %p669_p9, %p666_p8 }
  0x1b   :  { %674 = shalt.err (!%p671_p10)
}
  0x1c   :  { %s675_s1 = scalar_lea.vmem %s23_s16, 256  ;;  %p680_p12 = scmp.lt.s32.totalorder %s23_s16, %s23_s16 }
  0x1d   :  { %p676_p11 = scmp.ne.s32.totalorder %s23_s16, %s675_s1  ;;  %p681_p13 = scmp.lt.s32.totalorder %s675_s1, %s675_s1 }
  0x1f   :  { %p682_p0 = por %p681_p13, %p680_p12 }
  0x21   :  { %p683_p1 = pnand %p682_p0, %p676_p11 }
  0x23   :  { %686 = shalt.err (!%p683_p1)
}
  0x24   :  { %25 = dma.hbm_to_vmem [thread:$0]  %s882_s0, 256, %s23_s16, [#allocation3]  }
  0x25   :  { %s687_s30 = scalar_lea.hbm %s885_s3, 4096 }
  0x26   :  { %p688_p2 = scmp.ne.s32.totalorder %s885_s3, %s687_s30  ;;  %p691_p3 = scmp.lt.u32.totalorder %s687_s30, %s885_s3 }
  0x28   :  { %p693_p4 = pnand %p691_p3, %p688_p2 }
  0x2a   :  { %696 = shalt.err (!%p693_p4)
}
  0x2b   :  { %s697_s12 = scalar_lea.vmem %s46_s18, 4096  ;;  %p702_p6 = scmp.lt.s32.totalorder %s46_s18, %s46_s18 }
  0x2c   :  { %p698_p5 = scmp.ne.s32.totalorder %s46_s18, %s697_s12  ;;  %p703_p7 = scmp.lt.s32.totalorder %s697_s12, %s697_s12 }
  0x2e   :  { %p704_p8 = por %p703_p7, %p702_p6 }
  0x30   :  { %p705_p9 = pnand %p704_p8, %p698_p5 }
  0x32   :  { %708 = shalt.err (!%p705_p9)
}
  0x33   :  { %s766_s0 = smov 128   ;;  %s767_s13 = smov 8  }
  0x34   :  { %51 = dma.hbm_to_vmem [thread:$0]  %s885_s3, 4096, %s46_s18, [#allocation6], %s766_s0, %s766_s0, %s767_s13  }
  0x35   :  { %s768_s16 = smov [#allocation8]   ;;  %s709_s21 = scalar_lea.hbm %s887_s5, 2048 }
  0x36   :  { %s59_s17 = sshll.u32 %s768_s16, 4  ;;  %p710_p10 = scmp.ne.s32.totalorder %s887_s5, %s709_s21  ;;  %s60_s17 = int_to_ptr.vmem [resolvable:$true] %s59_s17 }
  0x37   :  { %p713_p11 = scmp.lt.u32.totalorder %s709_s21, %s887_s5 }
  0x39   :  { %p715_p12 = pnand %p713_p11, %p710_p10 }
  0x3b   :  { %718 = shalt.err (!%p715_p12)
}
  0x3c   :  { %s719_s1 = scalar_lea.vmem %s60_s17, 2048  ;;  %p724_p0 = scmp.lt.s32.totalorder %s60_s17, %s60_s17 }
  0x3d   :  { %p720_p13 = scmp.ne.s32.totalorder %s60_s17, %s719_s1  ;;  %p725_p1 = scmp.lt.s32.totalorder %s719_s1, %s719_s1 }
  0x3f   :  { %p726_p2 = por %p725_p1, %p724_p0 }
  0x41   :  { %p727_p3 = pnand %p726_p2, %p720_p13 }
  0x43   :  { %730 = shalt.err (!%p727_p3)
}
  0x44   :  { %65 = dma.hbm_to_vmem [thread:$0]  %s887_s5, 2048, %s60_s17, [#allocation9], %s766_s0, %s766_s0, %s767_s13  }
  0x45   :  { %753 = dma.done.wait [#allocation3], 256  }
  0x46   :  { %754 = vsyncadd [#allocation3], 4294967040 }
  0x47   :  { %755 = dma.done.wait [#allocation6], 9216  }
  0x48   :  { %756 = vsyncadd [#allocation6], 4294958080 }
  0x49   :  { %757 = dma.done.wait [#allocation9], 2048  }
  0x4a   :  { %758 = vsyncadd [#allocation9], 4294965248  ;;  %v83_v0 = vld [vmem:[#allocation5 + $0x8] sm:$0xff]  ;;  %v85_v1 = vld [vmem:[#allocation5 + $0x18] sm:$0xff]  ;;  %vm134_vm0 = vcmask 261120   ;;  %vm770_vm1 = vmmov 0  }
  0x4b   :  { %v82_v2 = vld [vmem:[#allocation5] sm:$0xff]  ;;  %v531_v3 = vpack.c.bf16 %v85_v1, %v83_v0  ;;  %v84_v4 = vld [vmem:[#allocation5 + $0x10] sm:$0xff]  ;;  %v87_v5 = vld [vmem:[#allocation5 + $0x28] sm:$0xff] }
  0x4c   :  { %v89_v6 = vld [vmem:[#allocation5 + $0x38] sm:$0xff]  ;;  %v533_v7 = vpack.c.bf16 %v84_v4, %v82_v2  ;;  %v86_v9 = vld [vmem:[#allocation5 + $0x20] sm:$0xff]  ;;  %v88_v10 = vld [vmem:[#allocation5 + $0x30] sm:$0xff] }
  0x4d   :  { %v535_v8 = vpack.c.bf16 %v89_v6, %v87_v5  ;;  %v91_v11 = vld [vmem:[#allocation5 + $0x48] sm:$0xff]  ;;  %532 = vmatprep.subr.bf16.mxu0 %v531_v3  ;;  %v93_v12 = vld [vmem:[#allocation5 + $0x58] sm:$0xff]  ;;  %v537_v13 = vpack.c.bf16 %v88_v10, %v86_v9  ;;  %v90_v15 = vld [vmem:[#allocation5 + $0x40] sm:$0xff] }
  0x4e   :  { %534 = vmatpush1.bf16.msra.mxu0 %v533_v7  ;;  %v539_v14 = vpack.c.bf16 %v93_v12, %v91_v11  ;;  %v92_v16 = vld [vmem:[#allocation5 + $0x50] sm:$0xff]  ;;  %v95_v17 = vld [vmem:[#allocation5 + $0x68] sm:$0xff]  ;;  %v97_v18 = vld [vmem:[#allocation5 + $0x78] sm:$0xff] }
  0x4f   :  { %536 = vmatprep.subr.bf16.mxu0 %v535_v8  ;;  %v541_v19 = vpack.c.bf16 %v92_v16, %v90_v15  ;;  %v543_v20 = vpack.c.bf16 %v97_v18, %v95_v17  ;;  %v94_v21 = vld [vmem:[#allocation5 + $0x60] sm:$0xff]  ;;  %v96_v22 = vld [vmem:[#allocation5 + $0x70] sm:$0xff]  ;;  %v99_v23 = vld [vmem:[#allocation5 + $0x88] sm:$0xff] }
  0x50   :  { %v101_v24 = vld [vmem:[#allocation5 + $0x98] sm:$0xff]  ;;  %v545_v25 = vpack.c.bf16 %v96_v22, %v94_v21  ;;  %v98_v26 = vld [vmem:[#allocation5 + $0x80] sm:$0xff]  ;;  %v100_v27 = vld [vmem:[#allocation5 + $0x90] sm:$0xff] }
  0x51   :  { %v547_v28 = vpack.c.bf16 %v101_v24, %v99_v23  ;;  %v103_v29 = vld [vmem:[#allocation5 + $0xa8] sm:$0xff]  ;;  %v105_v30 = vld [vmem:[#allocation5 + $0xb8] sm:$0xff]  ;;  %v227_v32 = vld [vmem:[#allocation7 + $0x80] sm:$0xff]  ;;  %v549_v39 = vpack.c.bf16 %v100_v27, %v98_v26 }
  0x52   :  { %538 = vmatpush1.bf16.msra.mxu0 %v537_v13  ;;  %v81_v31 = vld [vmem:[#allocation2 + $0x8] sm:$0xff]  ;;  %v228_v33 = vld [vmem:[#allocation7 + $0x88] sm:$0xff]  ;;  %v211_v34 = vld [vmem:[#allocation7] sm:$0xff]  ;;  %v551_v45 = vpack.c.bf16 %v105_v30, %v103_v29 }
  0x53   :  { %540 = vmatprep.subr.bf16.mxu0 %v539_v14  ;;  %441 = vmatprep.mubr.msk.f32.mxu0 %vm134_vm0, %v81_v31  ;;  %v571_v35 = vpack.c.bf16 %v228_v33, %v227_v32  ;;  %v212_v36 = vld [vmem:[#allocation7 + $0x8] sm:$0xff]  ;;  %v229_v37 = vld [vmem:[#allocation7 + $0x90] sm:$0xff]  ;;  %v230_v38 = vld [vmem:[#allocation7 + $0x98] sm:$0xff] }
  0x54   :  { %v573_v40 = vpack.c.bf16 %v212_v36, %v211_v34  ;;  %v575_v41 = vpack.c.bf16 %v230_v38, %v229_v37  ;;  %v213_v42 = vld [vmem:[#allocation7 + $0x10] sm:$0xff]  ;;  %v214_v43 = vld [vmem:[#allocation7 + $0x18] sm:$0xff]  ;;  %v231_v44 = vld [vmem:[#allocation7 + $0xa0] sm:$0xff] }
  0x55   :  { %v102_v46 = vld [vmem:[#allocation5 + $0xa0] sm:$0xff]  ;;  %v104_v47 = vld [vmem:[#allocation5 + $0xb0] sm:$0xff]  ;;  %572 = vmatprep.subr.bf16.mxu1 %v571_v35  ;;  %v232_v48 = vld [vmem:[#allocation7 + $0xa8] sm:$0xff]  ;;  %v577_v51 = vpack.c.bf16 %v214_v43, %v213_v42 }
  0x56   :  { %542 = vmatpush1.bf16.msra.mxu0 %v541_v19  ;;  %v107_v49 = vld [vmem:[#allocation5 + $0xc8] sm:$0xff]  ;;  %v109_v50 = vld [vmem:[#allocation5 + $0xd8] sm:$0xff]  ;;  %574 = vmatpush3.bf16.msra.mxu1 %v573_v40  ;;  %v579_v52 = vpack.c.bf16 %v232_v48, %v231_v44  ;;  %v215_v53 = vld [vmem:[#allocation7 + $0x20] sm:$0xff]  ;;  %v553_v55 = vpack.c.bf16 %v104_v47, %v102_v46  ;;  %v769_v46 = vmov 0.0|0.0   ;;  %v124_v47 = vlaneseq }
  0x57   :  { %544 = vmatprep.subr.bf16.mxu0 %v543_v20  ;;  %576 = vmatprep.subr.bf16.mxu1 %v575_v41  ;;  %v216_v54 = vld [vmem:[#allocation7 + $0x28] sm:$0xff]  ;;  %v233_v56 = vld [vmem:[#allocation7 + $0xb0] sm:$0xff]  ;;  %v234_v57 = vld [vmem:[#allocation7 + $0xb8] sm:$0xff]  ;;  %v555_v58 = vpack.c.bf16 %v109_v50, %v107_v49 }
  0x58   :  { %v106_v59 = vld [vmem:[#allocation5 + $0xc0] sm:$0xff]  ;;  %v108_v60 = vld [vmem:[#allocation5 + $0xd0] sm:$0xff]  ;;  %v111_v61 = vld [vmem:[#allocation5 + $0xe8] sm:$0xff]  ;;  %v581_v63 = vpack.c.bf16 %v216_v54, %v215_v53  ;;  %v583_v0 = vpack.c.bf16 %v234_v57, %v233_v56  ;;  %v125_v48 = vshrl.u32 %v124_v47, 7 }
  0x59   :  { %v113_v62 = vld [vmem:[#allocation5 + $0xf8] sm:$0xff]  ;;  %v217_v1 = vld [vmem:[#allocation7 + $0x30] sm:$0xff]  ;;  %v557_v3 = vpack.c.bf16 %v108_v60, %v106_v59  ;;  %v235_v4 = vld [vmem:[#allocation7 + $0xc0] sm:$0xff] }
  0x5a   :  { %546 = vmatpush1.bf16.msra.mxu0 %v545_v25  ;;  %578 = vmatpush3.bf16.msra.mxu1 %v577_v51  ;;  %v218_v2 = vld [vmem:[#allocation7 + $0x38] sm:$0xff]  ;;  %v236_v5 = vld [vmem:[#allocation7 + $0xc8] sm:$0xff]  ;;  %v559_v6 = vpack.c.bf16 %v113_v62, %v111_v61  ;;  %v110_v7 = vld [vmem:[#allocation5 + $0xe0] sm:$0xff]  ;;  %v126_v49 = vsub.s32 0, %v125_v48  ;;  %v130_v51 = vsub.s32 1, %v125_v48 }
  0x5b   :  { %548 = vmatprep.subr.bf16.mxu0 %v547_v28  ;;  %580 = vmatprep.subr.bf16.mxu1 %v579_v52  ;;  %v112_v8 = vld [vmem:[#allocation5 + $0xf0] sm:$0xff]  ;;  %v115_v9 = vld [vmem:[#allocation5 + $0x108] sm:$0xff]  ;;  %v117_v10 = vld [vmem:[#allocation5 + $0x118] sm:$0xff]  ;;  %v585_v11 = vpack.c.bf16 %v218_v2, %v217_v1  ;;  %v587_v12 = vpack.c.bf16 %v236_v5, %v235_v4 }
  0x5c   :  { %v219_v13 = vld [vmem:[#allocation7 + $0x40] sm:$0xff]  ;;  %v220_v14 = vld [vmem:[#allocation7 + $0x48] sm:$0xff]  ;;  %v561_v15 = vpack.c.bf16 %v112_v8, %v110_v7  ;;  %v237_v16 = vld [vmem:[#allocation7 + $0xd0] sm:$0xff]  ;;  %v563_v18 = vpack.c.bf16 %v117_v10, %v115_v9 }
  0x5d   :  { %v238_v17 = vld [vmem:[#allocation7 + $0xd8] sm:$0xff]  ;;  %v114_v19 = vld [vmem:[#allocation5 + $0x100] sm:$0xff]  ;;  %v116_v20 = vld [vmem:[#allocation5 + $0x110] sm:$0xff]  ;;  %v589_v23 = vpack.c.bf16 %v220_v14, %v219_v13 }
  0x5e   :  { %550 = vmatpush1.bf16.msra.mxu0 %v549_v39  ;;  %582 = vmatpush3.bf16.msra.mxu1 %v581_v63  ;;  %v119_v21 = vld [vmem:[#allocation5 + $0x128] sm:$0xff]  ;;  %v121_v22 = vld [vmem:[#allocation5 + $0x138] sm:$0xff]  ;;  %v591_v24 = vpack.c.bf16 %v238_v17, %v237_v16  ;;  %v221_v25 = vld [vmem:[#allocation7 + $0x50] sm:$0xff]  ;;  %v565_v27 = vpack.c.bf16 %v116_v20, %v114_v19  ;;  %v771_v20 = vmov 0.0  }
  0x5f   :  { %552 = vmatprep.subr.bf16.mxu0 %v551_v45  ;;  %584 = vmatprep.subr.bf16.mxu1 %v583_v0  ;;  %v222_v26 = vld [vmem:[#allocation7 + $0x58] sm:$0xff]  ;;  %v239_v28 = vld [vmem:[#allocation7 + $0xe0] sm:$0xff]  ;;  %v240_v29 = vld [vmem:[#allocation7 + $0xe8] sm:$0xff]  ;;  %v567_v30 = vpack.c.bf16 %v121_v22, %v119_v21 }
  0x60   :  { %v118_v31 = vld [vmem:[#allocation5 + $0x120] sm:$0xff]  ;;  %v120_v32 = vld [vmem:[#allocation5 + $0x130] sm:$0xff]  ;;  %v593_v33 = vpack.c.bf16 %v222_v26, %v221_v25  ;;  %v595_v34 = vpack.c.bf16 %v240_v29, %v239_v28  ;;  %v224_v38 = vld [vmem:[#allocation7 + $0x68] sm:$0xff] }
  0x61   :  { %v569_v35 = vpack.c.bf16 %v120_v32, %v118_v31  ;;  %v80_v36 = vld [vmem:[#allocation2] sm:$0xff]  ;;  %v223_v37 = vld [vmem:[#allocation7 + $0x60] sm:$0xff]  ;;  %v242_v41 = vld [vmem:[#allocation7 + $0xf8] sm:$0xff] }
  0x62   :  { %554 = vmatpush1.bf16.msra.mxu0 %v553_v55  ;;  %586 = vmatpush3.bf16.msra.mxu1 %v585_v11  ;;  %v597_v39 = vpack.c.bf16 %v224_v38, %v223_v37  ;;  %v241_v40 = vld [vmem:[#allocation7 + $0xf0] sm:$0xff]  ;;  %v226_v44 = vld [vmem:[#allocation7 + $0x78] sm:$0xff]  ;;  %v321_v57 = vld [vmem:[#allocation8] sm:$0xff] }
  0x63   :  { %556 = vmatprep.subr.bf16.mxu0 %v555_v58  ;;  %588 = vmatprep.subr.bf16.mxu1 %v587_v12  ;;  %v599_v42 = vpack.c.bf16 %v242_v41, %v241_v40  ;;  %v225_v43 = vld [vmem:[#allocation7 + $0x70] sm:$0xff]  ;;  %v322_v58 = vld [vmem:[#allocation8 + $0x8] sm:$0xff]  ;;  %v324_v0 = vld [vmem:[#allocation8 + $0x18] sm:$0xff] }
  0x64   :  { %v601_v45 = vpack.c.bf16 %v226_v44, %v225_v43  ;;  %v122_v50 = vld [vmem:[%s884_s2] sm:$0x3]  ;;  %v604_v61 = vpack.c.bf16 %v322_v58, %v321_v57  ;;  %v325_v2 = vld [vmem:[#allocation8 + $0x20] sm:$0xff]  ;;  %v330_v9 = vld [vmem:[#allocation8 + $0x48] sm:$0xff] }
  0x65   :  { %v127_v52 = vrot.slane %v122_v50, %v126_v49  ;;  %v131_v53 = vrot.slane %v122_v50, %v130_v51  ;;  %v323_v63 = vld [vmem:[#allocation8 + $0x10] sm:$0xff]  ;;  %v329_v8 = vld [vmem:[#allocation8 + $0x40] sm:$0xff]  ;;  %v332_v12 = vld [vmem:[#allocation8 + $0x58] sm:$0xff] }
  0x66   :  { %558 = vmatpush1.bf16.msra.mxu0 %v557_v3  ;;  %590 = vmatpush3.bf16.msra.mxu1 %v589_v23  ;;  %v607_v1 = vpack.c.bf16 %v324_v0, %v323_v63  ;;  %v326_v3 = vld [vmem:[#allocation8 + $0x28] sm:$0xff]  ;;  %v327_v5 = vld [vmem:[#allocation8 + $0x30] sm:$0xff]  ;;  %v616_v10 = vpack.c.bf16 %v330_v9, %v329_v8  ;;  %v333_v14 = vld [vmem:[#allocation8 + $0x60] sm:$0xff] }
  0x67   :  { %560 = vmatprep.subr.bf16.mxu0 %v559_v6  ;;  %592 = vmatprep.subr.bf16.mxu1 %v591_v24  ;;  %v610_v4 = vpack.c.bf16 %v326_v3, %v325_v2  ;;  %v328_v6 = vld [vmem:[#allocation8 + $0x38] sm:$0xff]  ;;  %v331_v11 = vld [vmem:[#allocation8 + $0x50] sm:$0xff] }
  0x68   :  { %v613_v7 = vpack.c.bf16 %v328_v6, %v327_v5  ;;  %v619_v13 = vpack.c.bf16 %v332_v12, %v331_v11  ;;  %v335_v17 = vld [vmem:[#allocation8 + $0x70] sm:$0xff] }
  0x69   :  { %v442_v22 = vld [vmem:[%s886_s4] ss:$0 sm:$0xff]  ;;  %s772_s4 = smov [#allocation10]  }
  0x6a   :  { %562 = vmatpush1.bf16.msra.mxu0 %v561_v15  ;;  %594 = vmatpush3.bf16.msra.mxu1 %v593_v33  ;;  %v334_v15 = vld [vmem:[#allocation8 + $0x68] sm:$0xff]  ;;  %s430_s30 = sshll.u32 %s772_s4, 4  ;;  %s431_s30 = int_to_ptr.vmem [resolvable:$true] %s430_s30 }
  0x6b   :  { %564 = vmatprep.subr.bf16.mxu0 %v563_v18  ;;  %596 = vmatprep.subr.bf16.mxu1 %v595_v34  ;;  %v622_v16 = vpack.c.bf16 %v334_v15, %v333_v14  ;;  %v336_v18 = vld [vmem:[#allocation8 + $0x78] sm:$0xff]  ;;  %s731_s8 = scalar_lea.vmem %s431_s30, 128  ;;  %p736_p5 = scmp.lt.s32.totalorder %s431_s30, %s431_s30 }
  0x6c   :  { %v625_v19 = vpack.c.bf16 %v336_v18, %v335_v17  ;;  %p732_p4 = scmp.ne.s32.totalorder %s431_s30, %s731_s8  ;;  %p737_p6 = scmp.lt.s32.totalorder %s731_s8, %s731_s8 }
  0x6e   :  { %566 = vmatpush1.bf16.msra.mxu0 %v565_v27  ;;  %598 = vmatpush3.bf16.msra.mxu1 %v597_v39  ;;  %v443_v27 = vld [vmem:[%s888_s6] ss:$0 sm:$0xff]  ;;  %p738_p7 = por %p737_p6, %p736_p5 }
  0x6f   :  { %568 = vmatprep.subr.bf16.mxu0 %v567_v30  ;;  %600 = vmatprep.subr.bf16.mxu1 %v599_v42 }
  0x70   :  { %p739_p8 = pnand %p738_p7, %p732_p4 }
  0x72   :  { %570 = vmatpush1.bf16.msra.mxu0 %v569_v35  ;;  %602 = vmatpush3.bf16.msra.mxu1 %v601_v45 }
  0x73   :  { %603 = vmatprep.subr.bf16.mxu1 %v769_v46 }
  0x75   :  { %203 = vmatmul.mubr.f32.vlgmr.msra.gmra.mrb[0].mxu0 %v80_v36 }
 0x148   :  { %v204_v54 = vpop.f32.mrb[0].mxu0 }
 0x149   :  { %v205_v55 = vadd.f32 %v204_v54, %v127_v52  ;;  %v206_v56 = vpop.f32.mrb[1].mxu0 }
 0x14a   :  { %v207_v59 = vadd.f32 %v206_v56, %v131_v53 }
 0x14b   :  { %v209_v62 = vmax.f32 %v205_v55, 0.0 }
 0x14c   :  { %v210_v60 = vmax.f32 %v207_v59, 0.0 }
 0x14e   :  { %314 = vmatprep.mubr.f32.mxu1 %v210_v60 }
 0x14f   :  { %315 = vmatmul.mubr.f32.vlgmr.msra.gmra.mrb[0].mxu1 %v209_v62 }
 0x150   :  { %605 = vmatpush3.bf16.msra.mxu1 %v604_v61  ;;  %528 = vmatprep.mubr.msk.f32.mxu1 %vm770_vm1, %v771_v20 }
 0x151   :  { %606 = vmatprep.subr.bf16.mxu1 %v769_v46 }
 0x154   :  { %608 = vmatpush3.bf16.msra.mxu1 %v607_v1 }
 0x155   :  { %609 = vmatprep.subr.bf16.mxu1 %v769_v46 }
 0x158   :  { %611 = vmatpush3.bf16.msra.mxu1 %v610_v4 }
 0x159   :  { %612 = vmatprep.subr.bf16.mxu1 %v769_v46 }
 0x15c   :  { %614 = vmatpush3.bf16.msra.mxu1 %v613_v7 }
 0x15d   :  { %615 = vmatprep.subr.bf16.mxu1 %v769_v46 }
 0x160   :  { %617 = vmatpush3.bf16.msra.mxu1 %v616_v10 }
 0x161   :  { %618 = vmatprep.subr.bf16.mxu1 %v769_v46 }
 0x164   :  { %620 = vmatpush3.bf16.msra.mxu1 %v619_v13 }
 0x165   :  { %621 = vmatprep.subr.bf16.mxu1 %v769_v46 }
 0x168   :  { %623 = vmatpush3.bf16.msra.mxu1 %v622_v16 }
 0x169   :  { %624 = vmatprep.subr.bf16.mxu1 %v769_v46 }
 0x16c   :  { %626 = vmatpush3.bf16.msra.mxu1 %v625_v19 }
 0x222   :  { %v476_v21 = vpop.f32.mrb[0].mxu1 }
 0x223   :  { %v477_v23 = vpop.f32.mrb[1].mxu1 }
 0x224   :  { %v478_v24 = vadd.f32 %v477_v23, %v476_v21 }
 0x226   :  { %v317_v25 = vadd.f32 %v478_v24, %v442_v22 }
 0x228   :  { %v320_v26 = vmax.f32 %v317_v25, 0.0 }
 0x22a   :  { %529 = vmatmul.mubr.f32.vlgmr.msra.gmra.mrb[2].mxu1 %v320_v26 }
 0x2fd   :  { %v410_v28 = vpop.f32.mrb[2].mxu1 }
 0x2fe   :  { %v411_v29 = vadd.f32 %v443_v27, %v410_v28  ;;  %v530_v30 = vpop.f32.mrb[3].mxu1 }
 0x300   :  { %414 = vmax.xlane.f32.xlu0 %v411_v29 }
 0x38d   :  { %v415_v31 = vpop.xlane.xlu0 %414 }
 0x38e   :  { %v416_v32 = vsub.f32 %v411_v29, %v415_v31 }
 0x390   :  { %v417_v33 = vmul.f32 1.442695, %v416_v32 }
 0x392   :  { %639 = vpow2.f32 %v417_v33 }
 0x39c   :  { %v640_v34 = vpop.eup %639 }
 0x39d   :  { %419 = vadd.xlane.f32.xlu0 %v640_v34 }
 0x42a   :  { %v420_v35 = vpop.xlane.xlu0 %419 }
 0x42b   :  { %641 = vrcp.f32 %v420_v35 }
 0x435   :  { %v642_v36 = vpop.eup %641 }
 0x436   :  { %v422_v37 = vmul.f32 %v642_v36, %v640_v34 }
 0x438   :  { %423 = vst [vmem:[#allocation10] sm:$0xff] %v422_v37 }
 0x439   :  { %742 = shalt.err (!%p739_p8)
}
 0x43a   :  { %s743_s10 = scalar_lea.hbm %s889_s7, 128 }
 0x43b   :  { %p744_p9 = scmp.ne.s32.totalorder %s889_s7, %s743_s10  ;;  %p747_p10 = scmp.lt.u32.totalorder %s743_s10, %s889_s7 }
 0x43d   :  { %p749_p11 = pnand %p747_p10, %p744_p9 }
 0x43f   :  { %752 = shalt.err (!%p749_p11)
}
 0x440   :  { %433 = dma.vmem_to_hbm [thread:$0]  %s431_s30, 128, %s889_s7, [#allocation4]  }
 0x441   :  { %759 = dma.done.wait [#allocation4], 128  }
 0x442   :  { %760 = vsyncadd [#allocation4], 4294967168 }
 0x443   :  { %437 = vsyncpa [#allocation3], 1 }
 0x444   :  { %438 = vsyncpa [#allocation6], 1 }
 0x445   :  { %439 = vsyncpa [#allocation9], 1 }
 0x446   :  { %440 = vsyncpa [#allocation4], 1 }

</bundles_post_ra>
